<compile_context>
chip_gen: v7x
topology: tpu7x:2x2x1
jax: 0.10.0
libtpu: 0.0.40
codegen_flags: <defaults>
</compile_context>

<pallas_src>
import functools

import jax
import jax.numpy as jnp
from jax.experimental import pallas as pl
from jax.experimental.pallas import tpu as pltpu

_LANE = 128
_SUBLANE = 8
_MAX_DMA_CHUNKS = 4


def _choose_slab(total: int):
    """Pick (rows, cols) for the flat buffer: cols a multiple of 128 (<= 2048),
    rows a multiple of 8 when possible, so the HBM tiled layout has no padding.
    Returns None if `total` is not a multiple of 128 (fallback path)."""
    if total % _LANE:
        return None
    cap = min(total, 2048)
    cols = _LANE
    cols_dense = None
    c = _LANE
    while c <= cap:
        if total % c == 0:
            cols = c                      # largest 128-multiple divisor
            if (total // c) % _SUBLANE == 0:
                cols_dense = c            # ... that also keeps rows % 8 == 0
        c += _LANE
    if cols_dense is not None:
        cols = cols_dense
    return total // cols, cols


def _row_chunks(rows: int, max_chunks: int = _MAX_DMA_CHUNKS):
    """Split `rows` into up to `max_chunks` contiguous ranges whose starts and
    sizes are multiples of 8 sublanes (tile-aligned DMAs).  Falls back to a
    single whole-array chunk when rows are small or not 8-aligned."""
    if max_chunks <= 1 or rows % _SUBLANE != 0 or rows < 2 * _SUBLANE:
        return ((0, rows),)
    n = min(max_chunks, rows // _SUBLANE)
    base = (rows // n) // _SUBLANE * _SUBLANE
    chunks = []
    start = 0
    for i in range(n):
        size = base if i < n - 1 else rows - start
        if size > 0:
            chunks.append((start, size))
        start += size
    return tuple(chunks)


def _dma_copy_kernel(x_ref, o_ref, sem_ref, *, chunks):
    # Direct HBM -> HBM copy: start all chunk DMAs, then wait on all of them.
    copies = []
    for i, (start, size) in enumerate(chunks):
        cp = pltpu.make_async_copy(
            x_ref.at[pl.ds(start, size), :],
            o_ref.at[pl.ds(start, size), :],
            sem_ref.at[i],
        )
        cp.start()
        copies.append(cp)
    for cp in copies:
        cp.wait()


def flatten_layer(x: jax.Array) -> jax.Array:
    """Equivalent of FlattenLayer.forward: x.view(x.shape[0], -1).

    x: (N, C, H, W) (or any (N, ...)) input.
    returns: (N, prod(rest)), same dtype.
    """
    n = x.shape[0]
    d = 1
    for s in x.shape[1:]:
        d *= s
    total = n * d
    itemsize = jnp.dtype(x.dtype).itemsize

    # Lane/sublane-dense slab shape for the copy.  All reshapes are free
    # metadata ops; row-major element order is preserved end to end, so the
    # result matches torch's .view on a contiguous tensor.
    slab = _choose_slab(total)
    rows, cols = slab if slab is not None else (n, d)
    x_slab = jnp.reshape(x, (rows, cols))

    chunks = _row_chunks(rows)

    out = pl.pallas_call(
        functools.partial(_dma_copy_kernel, chunks=chunks),
        out_shape=jax.ShapeDtypeStruct((rows, cols), x.dtype),
        # Raw HBM refs on both sides: no auto-DMA, no VMEM staging.
        in_specs=[pl.BlockSpec(memory_space=pl.ANY)],
        out_specs=pl.BlockSpec(memory_space=pl.ANY),
        scratch_shapes=[pltpu.SemaphoreType.DMA((len(chunks),))],
        cost_estimate=pl.CostEstimate(
            flops=0,
            transcendentals=0,
            bytes_accessed=2 * total * itemsize),
    )(x_slab)

    # Glue: back to (batch, -1) — pure metadata reshape.
    return jnp.reshape(out, (n, d))


if __name__ == "__main__":
    key = jax.random.PRNGKey(0)
    # Small NCHW input consistent with the module's usage (conv-net feature map).
    x = jax.random.normal(key, (2, 4, 16, 16), dtype=jnp.float32)

    y = flatten_layer(x)
    jax.block_until_ready(y)

    # Correctness check against the pure-JAX reference of torch's .view.
    ref = jnp.reshape(x, (x.shape[0], -1))
    assert y.shape == (2, 4 * 16 * 16), y.shape
    assert y.dtype == x.dtype
    assert bool(jnp.array_equal(y, ref))

    print("KERNEL_OK")
</pallas_src>

<mosaic_0001>
module attributes {stable_mosaic.version = 11 : i64} {
  func.func @_dma_copy_kernel(%arg0: memref<8x256xf32, #tpu.memory_space<any>>, %arg1: memref<8x256xf32, #tpu.memory_space<any>>, %arg2: memref<1x!tpu.dma_semaphore, #tpu.memory_space<semaphore_mem>>) attributes {dimension_semantics = [], scalar_prefetch = 0 : i64, scratch_operands = 1 : i64, tpu.core_type = #tpu.core_type<tc>} {
    %c0_i32 = arith.constant 0 : i32
    %c0_i32_0 = arith.constant 0 : i32
    %c0_i32_1 = arith.constant 0 : i32
    %0 = tpu.memref_slice %arg0[%c0_i32_0, %c0_i32_1] : memref<8x256xf32, #tpu.memory_space<any>> -> memref<8x256xf32, #tpu.memory_space<any>>
    %c0_i32_2 = arith.constant 0 : i32
    %c0_i32_3 = arith.constant 0 : i32
    %1 = tpu.memref_slice %arg1[%c0_i32_2, %c0_i32_3] : memref<8x256xf32, #tpu.memory_space<any>> -> memref<8x256xf32, #tpu.memory_space<any>>
    %2 = tpu.memref_slice %arg2[%c0_i32] : memref<1x!tpu.dma_semaphore, #tpu.memory_space<semaphore_mem>> -> memref<1x!tpu.dma_semaphore, #tpu.memory_space<semaphore_mem>>
    %3 = tpu.memref_squeeze %2 : memref<1x!tpu.dma_semaphore, #tpu.memory_space<semaphore_mem>> -> memref<!tpu.dma_semaphore, #tpu.memory_space<semaphore_mem>>
    tpu.enqueue_dma source(%0 : memref<8x256xf32, #tpu.memory_space<any>>) target(%1 : memref<8x256xf32, #tpu.memory_space<any>>) target_semaphore(%3 : memref<!tpu.dma_semaphore, #tpu.memory_space<semaphore_mem>>)
    %c0_i32_4 = arith.constant 0 : i32
    %c0_i32_5 = arith.constant 0 : i32
    %c0_i32_6 = arith.constant 0 : i32
    %4 = tpu.memref_slice %arg0[%c0_i32_5, %c0_i32_6] : memref<8x256xf32, #tpu.memory_space<any>> -> memref<8x256xf32, #tpu.memory_space<any>>
    %c0_i32_7 = arith.constant 0 : i32
    %c0_i32_8 = arith.constant 0 : i32
    %5 = tpu.memref_slice %arg1[%c0_i32_7, %c0_i32_8] : memref<8x256xf32, #tpu.memory_space<any>> -> memref<8x256xf32, #tpu.memory_space<any>>
    %6 = tpu.memref_slice %arg2[%c0_i32_4] : memref<1x!tpu.dma_semaphore, #tpu.memory_space<semaphore_mem>> -> memref<1x!tpu.dma_semaphore, #tpu.memory_space<semaphore_mem>>
    %7 = tpu.memref_squeeze %6 : memref<1x!tpu.dma_semaphore, #tpu.memory_space<semaphore_mem>> -> memref<!tpu.dma_semaphore, #tpu.memory_space<semaphore_mem>>
    tpu.wait_dma2 semaphore(%7 : memref<!tpu.dma_semaphore, #tpu.memory_space<semaphore_mem>>) src(%4 : memref<8x256xf32, #tpu.memory_space<any>>) dst(%5 : memref<8x256xf32, #tpu.memory_space<any>>)
    return
  }
}

</mosaic_0001>

<bundles_post_ra>
// kernel: tpu_custom_call.1
= control target key start
LH: loop header
LB: loop body
LE: loop exit
PB: predicated region body
PF: predicated region fallthrough
CT: control target
= control target key end

     0   :  { %s35_s6 = smov [#allocation2]   ;;  %s36_s7 = smov [#allocation3]   ;;  %s54_s0 = inlined_call_operand.hbm [shape: f32[8,256], index: 0, kind: input, shape index: {}]   ;;  %s55_s1 = inlined_call_operand.hbm [shape: f32[8,256], index: 1, kind: output, shape index: {}]  }
   0x1   :  { %s37_s8 = smov 0  }
   0x2   :  { %18 = dma.general %s54_s0, 256, %s55_s1, %s35_s6, %s36_s7, [#allocation4], %s37_s8, 0  }
   0x3   :  { %33 = dma.done.wait [#allocation2], 256 }
   0x4   :  { %34 = vsyncadd [#allocation2], 4294967040 }
   0x5   :  { %23 = vsyncmov [#allocation2] }
   0x8   :  { %s24_s13 = vpop.sfrf %23 }
   0x9   :  { %p29_p0 = scmp.ne.s32.totalorder %s24_s13, 0 }
   0xb   :  { %28 = shalt.err (%p29_p0)  }

</bundles_post_ra>
